<compile_context>
chip_gen: v5e
topology: v5e:2x2
jax: 0.10.0
libtpu: 0.0.40
codegen_flags: <defaults>
</compile_context>

<pallas_src>
import functools
import math

import jax
import jax.numpy as jnp
import numpy as np
from jax.experimental import pallas as pl
from jax.experimental.pallas import tpu as pltpu

EPS_NORM = 1e-12   # NormSE3 norm clamp
EPS_WSUM = 1e-6    # PoolSE3 weight-sum clamp


def _gelu(x):
    # TODO(synk): PyTorch nn.GELU() default is the exact erf-based GELU; using the tanh
    # approximation since erf lowering inside Mosaic is not guaranteed.
    return jax.nn.gelu(x, approximate=True)


def pool_se3_kernel(
    x0_ref, x1_ref, mask_ref, pool_b_ref,
    w0c_ref, scale0_ref, w_out0_ref,
    w_in1_ref, scale1_ref, w_out1_ref,
    out_ref,
    *, n_seq,
):
    x0 = x0_ref[0]            # (M, C0)     M = Bb * n_seq rows (batch-blocked, lane-dense)
    x1 = x1_ref[0]            # (M, 3*C1)   degree-1 features, (d, m) flat, m minor
    mask = mask_ref[0]        # (M, 1)

    m_rows, c0 = x0.shape
    bb = m_rows // n_seq
    e0 = scale0_ref.shape[1]
    e1 = scale1_ref.shape[1]
    ctot = c0 + x1.shape[1]   # C0 + 3*C1

    # ---- degree-0 project_in fused with the pooling logit (extra weight column) -----
    h0_all = jnp.dot(x0, w0c_ref[...], preferred_element_type=jnp.float32)   # (M, E0+1)
    h0 = h0_all[:, :e0]                                                      # (M, E0)
    logit = h0_all[:, e0:e0 + 1] + pool_b_ref[0, 0]                          # (M, 1)
    weight = jax.nn.sigmoid(logit) * mask                                    # (M, 1)

    # ---- NormSE3 + project_out, degree 0 (m == 1 -> norm is |h|) ---------------------
    norm0 = jnp.maximum(jnp.abs(h0), EPS_NORM)
    h0 = h0 * _gelu(norm0 * scale0_ref[...])
    v0 = jnp.dot(h0, w_out0_ref[...], preferred_element_type=jnp.float32)    # (M, C0)

    # ---- degree 1: block-structured weights keep m flattened on the lane axis -------
    h1 = jnp.dot(x1, w_in1_ref[...], preferred_element_type=jnp.float32)     # (M, 3*E1), m-major
    h1a = h1[:, 0:e1]
    h1b = h1[:, e1:2 * e1]
    h1c = h1[:, 2 * e1:3 * e1]
    norm1 = jnp.maximum(jnp.sqrt(h1a * h1a + h1b * h1b + h1c * h1c), EPS_NORM)   # (M, E1)
    t1 = _gelu(norm1 * scale1_ref[...])                                      # (M, E1)
    h1s = jnp.concatenate([h1a * t1, h1b * t1, h1c * t1], axis=-1)           # (M, 3*E1)
    v1 = jnp.dot(h1s, w_out1_ref[...], preferred_element_type=jnp.float32)   # (M, 3*C1), (f, m)

    # ---- masked, sigmoid-weighted pooling over N; all degrees in one packed slab ----
    wv = jnp.concatenate([v0 * weight, v1 * weight, weight], axis=-1)        # (M, Ctot+1)
    pooled = jnp.sum(wv.reshape(bb, n_seq, ctot + 1), axis=1)                # (Bb, Ctot+1)
    w_sum = jnp.maximum(pooled[:, ctot:ctot + 1], EPS_WSUM)                  # (Bb, 1)
    out_ref[0] = pooled[:, :ctot] * (1.0 / w_sum)                            # (Bb, Ctot)


def _pick_batch_block(batch, n, target_rows):
    """Largest divisor of `batch` with Bb*N <= target_rows (so M fills MXU/sublanes)."""
    best = 1
    for bb in range(1, batch + 1):
        if batch % bb == 0 and bb * n <= max(target_rows, n):
            best = bb
    return best


@functools.partial(jax.jit, static_argnames=("target_rows",))
def pool_se3(x0, x1, mask, params, *, target_rows=512):
    """x0: (B, N, C0, 1), x1: (B, N, C1, 3), mask: (B, N). Returns pooled feature dict."""
    B, N, c0, _ = x0.shape
    _, _, c1, m1 = x1.shape
    e1 = params["w_in1"].shape[1]
    ctot = c0 + m1 * c1

    bb = _pick_batch_block(B, N, target_rows)
    grid = B // bb
    m_rows = bb * N

    f32 = jnp.float32
    # Free reshapes only: no transpose / extra HBM round trip of the big inputs.
    x0_k = x0.reshape(grid, m_rows, c0).astype(f32)
    x1_k = x1.reshape(grid, m_rows, c1 * m1).astype(f32)     # (d, m) flat, m minor
    mask_k = mask.astype(f32).reshape(grid, m_rows, 1)

    # ---- tiny host/XLA-side parameter prep -------------------------------------------
    # pooling projection fused as an extra column of project_in (degree 0)
    w0c = jnp.concatenate([params["w_in0"].astype(f32), params["pool_w"].astype(f32)], axis=1)
    # degree-1 LinearSE3 weights expanded so m can stay flattened on the lane axis:
    #   w_in1_big[(d,m), (m',e)] = w_in1[d,e] * delta(m,m')
    #   w_out1_big[(m,e), (f,m')] = w_out1[e,f] * delta(m,m')
    eye3 = jnp.eye(m1, dtype=f32)
    w_in1_big = (params["w_in1"].astype(f32)[:, None, None, :]
                 * eye3[None, :, :, None]).reshape(m1 * c1, m1 * e1)
    w_out1_big = (eye3[:, None, None, :]
                  * params["w_out1"].astype(f32)[None, :, :, None]).reshape(m1 * e1, c1 * m1)
    scale0 = params["scale0"].astype(f32)
    scale1 = params["scale1"].astype(f32)
    w_out0 = params["w_out0"].astype(f32)
    pool_b = jnp.reshape(params["pool_b"], (1, 1)).astype(f32)

    full = lambda a: pl.BlockSpec(a.shape, lambda g: (0,) * a.ndim)

    packed = pl.pallas_call(
        functools.partial(pool_se3_kernel, n_seq=N),
        out_shape=jax.ShapeDtypeStruct((grid, bb, ctot), f32),
        grid=(grid,),
        in_specs=[
            pl.BlockSpec((1, m_rows, c0), lambda g: (g, 0, 0)),
            pl.BlockSpec((1, m_rows, c1 * m1), lambda g: (g, 0, 0)),
            pl.BlockSpec((1, m_rows, 1), lambda g: (g, 0, 0)),
            full(pool_b),
            full(w0c), full(scale0), full(w_out0),
            full(w_in1_big), full(scale1), full(w_out1_big),
        ],
        out_specs=pl.BlockSpec((1, bb, ctot), lambda g: (g, 0, 0)),
        compiler_params=pltpu.CompilerParams(dimension_semantics=("parallel",)),
    )(
        x0_k, x1_k, mask_k, pool_b,
        w0c, scale0, w_out0,
        w_in1_big, scale1, w_out1_big,
    )

    # split the packed lane-dense slab back into the PyTorch convention (B, 1, C, 2k+1)
    packed = packed.reshape(B, ctot)
    out0 = packed[:, :c0].reshape(B, 1, c0, 1)
    out1 = packed[:, c0:].reshape(B, 1, c1, m1)   # kernel emits (f, m) f-major -> free reshape
    return {"0": out0, "1": out1}


# ---------------- pure-JAX reference (mirrors the PyTorch forward) ---------------------
def reference(x0, x1, mask, p):
    w = jax.nn.sigmoid(jnp.einsum("bnc,co->bno", x0[..., 0], p["pool_w"]) + p["pool_b"][0, 0])
    w = (w * mask.astype(x0.dtype)[..., None])[..., None]            # (B, N, 1, 1)
    w_sum = jnp.maximum(jnp.sum(w, axis=-3, keepdims=True), EPS_WSUM)

    def ff(x, w_in, scale, w_out):
        h = jnp.einsum("bndm,de->bnem", x, w_in)
        norm = jnp.maximum(jnp.linalg.norm(h, axis=-1), EPS_NORM)    # (B, N, E)
        t = _gelu(norm * scale)                                      # scale (1, E)
        h = h * t[..., None]
        return jnp.einsum("bnem,ef->bnfm", h, w_out)

    v0 = ff(x0, p["w_in0"], p["scale0"], p["w_out0"])
    v1 = ff(x1, p["w_in1"], p["scale1"], p["w_out1"])
    out0 = jnp.sum(v0 * w, axis=-3, keepdims=True) / w_sum
    out1 = jnp.sum(v1 * w, axis=-3, keepdims=True) / w_sum
    return {"0": out0, "1": out1}


if __name__ == "__main__":
    B, N = 2, 8
    C0, C1, MULT = 8, 8, 4            # fiber = {'0': 8, '1': 8}

    key = jax.random.PRNGKey(0)
    ks = jax.random.split(key, 9)

    # deterministic synthetic parameters (shapes from the module's __init__)
    params = {
        "pool_w": jax.random.normal(ks[0], (C0, 1), jnp.float32) / math.sqrt(C0),
        "pool_b": jnp.full((1, 1), 0.25, jnp.float32),
        "w_in0": jax.random.normal(ks[1], (C0, MULT * C0), jnp.float32) / math.sqrt(C0),
        "scale0": 1.0 + 0.1 * jax.random.normal(ks[7], (1, MULT * C0), jnp.float32),
        "w_out0": jax.random.normal(ks[2], (MULT * C0, C0), jnp.float32) / math.sqrt(MULT * C0),
        "w_in1": jax.random.normal(ks[3], (C1, MULT * C1), jnp.float32) / math.sqrt(C1),
        "scale1": 1.0 + 0.1 * jax.random.normal(ks[8], (1, MULT * C1), jnp.float32),
        "w_out1": jax.random.normal(ks[4], (MULT * C1, C1), jnp.float32) / math.sqrt(MULT * C1),
    }

    # deterministic inputs (PyTorch layout: (B, N, C, 2k+1), mask (B, N))
    x0 = jax.random.normal(ks[5], (B, N, C0, 1), jnp.float32)
    x1 = jax.random.normal(ks[6], (B, N, C1, 3), jnp.float32)
    lengths = jnp.array([N, 5])
    mask = (jnp.arange(N)[None, :] < lengths[:, None]).astype(jnp.float32)   # (B, N)

    out = jax.block_until_ready(pool_se3(x0, x1, mask, params))
    ref = jax.block_until_ready(reference(x0, x1, mask, params))

    np.testing.assert_allclose(np.asarray(out["0"]), np.asarray(ref["0"]), rtol=1e-4, atol=1e-5)
    np.testing.assert_allclose(np.asarray(out["1"]), np.asarray(ref["1"]), rtol=1e-4, atol=1e-5)
    assert out["0"].shape == (B, 1, C0, 1) and out["1"].shape == (B, 1, C1, 3)

    print("KERNEL_OK")
</pallas_src>

<mosaic_0001>
module attributes {stable_mosaic.version = 11 : i64} {
  func.func @pool_se3_kernel(%arg0: i32, %arg1: memref<1x16x8xf32, #tpu.memory_space<vmem>>, %arg2: memref<1x16x24xf32, #tpu.memory_space<vmem>>, %arg3: memref<1x16x1xf32, #tpu.memory_space<vmem>>, %arg4: memref<1x1xf32, #tpu.memory_space<vmem>>, %arg5: memref<8x33xf32, #tpu.memory_space<vmem>>, %arg6: memref<1x32xf32, #tpu.memory_space<vmem>>, %arg7: memref<32x8xf32, #tpu.memory_space<vmem>>, %arg8: memref<24x96xf32, #tpu.memory_space<vmem>>, %arg9: memref<1x32xf32, #tpu.memory_space<vmem>>, %arg10: memref<96x24xf32, #tpu.memory_space<vmem>>, %arg11: memref<1x2x32xf32, #tpu.memory_space<vmem>>) attributes {dimension_semantics = [#tpu.dimension_semantics<parallel>], iteration_bounds = array<i64: 1>, scalar_prefetch = 0 : i64, scratch_operands = 0 : i64, tpu.core_type = #tpu.core_type<tc>, window_params = [{transform_indices = @transform_0, window_bounds = array<i64: 1, 16, 8>}, {transform_indices = @transform_1, window_bounds = array<i64: 1, 16, 24>}, {transform_indices = @transform_2, window_bounds = array<i64: 1, 16, 1>}, {pipeline_mode = #tpu.pipeline_mode<synchronous>, transform_indices = @transform_3, window_bounds = array<i64: 1, 1>}, {pipeline_mode = #tpu.pipeline_mode<synchronous>, transform_indices = @transform_4, window_bounds = array<i64: 8, 33>}, {pipeline_mode = #tpu.pipeline_mode<synchronous>, transform_indices = @transform_5, window_bounds = array<i64: 1, 32>}, {pipeline_mode = #tpu.pipeline_mode<synchronous>, transform_indices = @transform_6, window_bounds = array<i64: 32, 8>}, {pipeline_mode = #tpu.pipeline_mode<synchronous>, transform_indices = @transform_7, window_bounds = array<i64: 24, 96>}, {pipeline_mode = #tpu.pipeline_mode<synchronous>, transform_indices = @transform_8, window_bounds = array<i64: 1, 32>}, {pipeline_mode = #tpu.pipeline_mode<synchronous>, transform_indices = @transform_9, window_bounds = array<i64: 96, 24>}, {transform_indices = @transform_10, window_bounds = array<i64: 1, 2, 32>}]} {
    %c0 = arith.constant 0 : index
    %c0_0 = arith.constant 0 : index
    %c0_1 = arith.constant 0 : index
    %0 = vector.load %arg1[%c0, %c0_0, %c0_1] : memref<1x16x8xf32, #tpu.memory_space<vmem>>, vector<1x16x8xf32>
    %1 = vector.shape_cast %0 : vector<1x16x8xf32> to vector<16x8xf32>
    %c0_2 = arith.constant 0 : index
    %c0_3 = arith.constant 0 : index
    %c0_4 = arith.constant 0 : index
    %2 = vector.load %arg2[%c0_2, %c0_3, %c0_4] : memref<1x16x24xf32, #tpu.memory_space<vmem>>, vector<1x16x24xf32>
    %3 = vector.shape_cast %2 : vector<1x16x24xf32> to vector<16x24xf32>
    %c0_5 = arith.constant 0 : index
    %c0_6 = arith.constant 0 : index
    %c0_7 = arith.constant 0 : index
    %4 = vector.load %arg3[%c0_5, %c0_6, %c0_7] : memref<1x16x1xf32, #tpu.memory_space<vmem>>, vector<1x16x1xf32>
    %5 = vector.shape_cast %4 : vector<1x16x1xf32> to vector<16x1xf32>
    %c0_8 = arith.constant 0 : index
    %c0_9 = arith.constant 0 : index
    %6 = vector.load %arg5[%c0_8, %c0_9] : memref<8x33xf32, #tpu.memory_space<vmem>>, vector<8x33xf32>
    %cst = arith.constant dense<0.000000e+00> : vector<16x33xf32>
    %7 = tpu.matmul %1, %6, %cst {dimension_numbers = #tpu.dot_dimension_numbers<[1], [0], [0], [1], [0, 0, 1, 1], [], []>} : vector<16x8xf32>, vector<8x33xf32>, vector<16x33xf32> -> vector<16x33xf32>
    %8 = vector.extract_strided_slice %7 {offsets = [0, 0], sizes = [16, 32], strides = [1, 1]} : vector<16x33xf32> to vector<16x32xf32>
    %9 = vector.extract_strided_slice %7 {offsets = [0, 32], sizes = [16, 1], strides = [1, 1]} : vector<16x33xf32> to vector<16x1xf32>
    %c0_10 = arith.constant 0 : index
    %c0_11 = arith.constant 0 : index
    %10 = vector.load %arg4[%c0_10, %c0_11] : memref<1x1xf32, #tpu.memory_space<vmem>>, vector<1x1xf32>
    %11 = vector.extract %10[0, 0] : f32 from vector<1x1xf32>
    %12 = vector.broadcast %11 : f32 to vector<16x1xf32>
    %13 = arith.addf %9, %12 : vector<16x1xf32>
    %14 = arith.negf %13 : vector<16x1xf32>
    %15 = math.exp %14 : vector<16x1xf32>
    %cst_12 = arith.constant 1.000000e+00 : f32
    %16 = vector.broadcast %cst_12 : f32 to vector<16x1xf32>
    %17 = arith.addf %16, %15 : vector<16x1xf32>
    %18 = arith.divf %16, %17 : vector<16x1xf32>
    %19 = arith.mulf %18, %5 : vector<16x1xf32>
    %20 = math.absf %8 : vector<16x32xf32>
    %cst_13 = arith.constant 9.99999996E-13 : f32
    %21 = vector.broadcast %cst_13 : f32 to vector<16x32xf32>
    %22 = arith.maximumf %20, %21 : vector<16x32xf32>
    %c0_14 = arith.constant 0 : index
    %c0_15 = arith.constant 0 : index
    %23 = vector.load %arg6[%c0_14, %c0_15] : memref<1x32xf32, #tpu.memory_space<vmem>>, vector<1x32xf32>
    %24 = vector.broadcast %23 : vector<1x32xf32> to vector<16x32xf32>
    %25 = arith.mulf %22, %24 : vector<16x32xf32>
    %26 = arith.mulf %25, %25 : vector<16x32xf32>
    %27 = arith.mulf %25, %26 : vector<16x32xf32>
    %cst_16 = arith.constant 4.471500e-02 : f32
    %28 = vector.broadcast %cst_16 : f32 to vector<16x32xf32>
    %29 = arith.mulf %28, %27 : vector<16x32xf32>
    %30 = arith.addf %25, %29 : vector<16x32xf32>
    %cst_17 = arith.constant 0.797884583 : f32
    %31 = vector.broadcast %cst_17 : f32 to vector<16x32xf32>
    %32 = arith.mulf %31, %30 : vector<16x32xf32>
    %33 = math.tanh %32 : vector<16x32xf32>
    %cst_18 = arith.constant 1.000000e+00 : f32
    %34 = vector.broadcast %cst_18 : f32 to vector<16x32xf32>
    %35 = arith.addf %34, %33 : vector<16x32xf32>
    %cst_19 = arith.constant 5.000000e-01 : f32
    %36 = vector.broadcast %cst_19 : f32 to vector<16x32xf32>
    %37 = arith.mulf %36, %35 : vector<16x32xf32>
    %38 = arith.mulf %25, %37 : vector<16x32xf32>
    %39 = arith.mulf %8, %38 : vector<16x32xf32>
    %c0_20 = arith.constant 0 : index
    %c0_21 = arith.constant 0 : index
    %40 = vector.load %arg7[%c0_20, %c0_21] : memref<32x8xf32, #tpu.memory_space<vmem>>, vector<32x8xf32>
    %cst_22 = arith.constant dense<0.000000e+00> : vector<16x8xf32>
    %41 = tpu.matmul %39, %40, %cst_22 {dimension_numbers = #tpu.dot_dimension_numbers<[1], [0], [0], [1], [0, 0, 1, 1], [], []>} : vector<16x32xf32>, vector<32x8xf32>, vector<16x8xf32> -> vector<16x8xf32>
    %c0_23 = arith.constant 0 : index
    %c0_24 = arith.constant 0 : index
    %42 = vector.load %arg8[%c0_23, %c0_24] : memref<24x96xf32, #tpu.memory_space<vmem>>, vector<24x96xf32>
    %cst_25 = arith.constant dense<0.000000e+00> : vector<16x96xf32>
    %43 = tpu.matmul %3, %42, %cst_25 {dimension_numbers = #tpu.dot_dimension_numbers<[1], [0], [0], [1], [0, 0, 1, 1], [], []>} : vector<16x24xf32>, vector<24x96xf32>, vector<16x96xf32> -> vector<16x96xf32>
    %44 = vector.extract_strided_slice %43 {offsets = [0, 0], sizes = [16, 32], strides = [1, 1]} : vector<16x96xf32> to vector<16x32xf32>
    %45 = vector.extract_strided_slice %43 {offsets = [0, 32], sizes = [16, 32], strides = [1, 1]} : vector<16x96xf32> to vector<16x32xf32>
    %46 = vector.extract_strided_slice %43 {offsets = [0, 64], sizes = [16, 32], strides = [1, 1]} : vector<16x96xf32> to vector<16x32xf32>
    %47 = arith.mulf %44, %44 : vector<16x32xf32>
    %48 = arith.mulf %45, %45 : vector<16x32xf32>
    %49 = arith.addf %47, %48 : vector<16x32xf32>
    %50 = arith.mulf %46, %46 : vector<16x32xf32>
    %51 = arith.addf %49, %50 : vector<16x32xf32>
    %52 = math.sqrt %51 : vector<16x32xf32>
    %cst_26 = arith.constant 9.99999996E-13 : f32
    %53 = vector.broadcast %cst_26 : f32 to vector<16x32xf32>
    %54 = arith.maximumf %52, %53 : vector<16x32xf32>
    %c0_27 = arith.constant 0 : index
    %c0_28 = arith.constant 0 : index
    %55 = vector.load %arg9[%c0_27, %c0_28] : memref<1x32xf32, #tpu.memory_space<vmem>>, vector<1x32xf32>
    %56 = vector.broadcast %55 : vector<1x32xf32> to vector<16x32xf32>
    %57 = arith.mulf %54, %56 : vector<16x32xf32>
    %58 = arith.mulf %57, %57 : vector<16x32xf32>
    %59 = arith.mulf %57, %58 : vector<16x32xf32>
    %cst_29 = arith.constant 4.471500e-02 : f32
    %60 = vector.broadcast %cst_29 : f32 to vector<16x32xf32>
    %61 = arith.mulf %60, %59 : vector<16x32xf32>
    %62 = arith.addf %57, %61 : vector<16x32xf32>
    %cst_30 = arith.constant 0.797884583 : f32
    %63 = vector.broadcast %cst_30 : f32 to vector<16x32xf32>
    %64 = arith.mulf %63, %62 : vector<16x32xf32>
    %65 = math.tanh %64 : vector<16x32xf32>
    %cst_31 = arith.constant 1.000000e+00 : f32
    %66 = vector.broadcast %cst_31 : f32 to vector<16x32xf32>
    %67 = arith.addf %66, %65 : vector<16x32xf32>
    %cst_32 = arith.constant 5.000000e-01 : f32
    %68 = vector.broadcast %cst_32 : f32 to vector<16x32xf32>
    %69 = arith.mulf %68, %67 : vector<16x32xf32>
    %70 = arith.mulf %57, %69 : vector<16x32xf32>
    %71 = arith.mulf %44, %70 : vector<16x32xf32>
    %72 = arith.mulf %45, %70 : vector<16x32xf32>
    %73 = arith.mulf %46, %70 : vector<16x32xf32>
    %74 = tpu.concatenate %71, %72, %73 in 1 : vector<16x32xf32>, vector<16x32xf32>, vector<16x32xf32> -> vector<16x96xf32>
    %c0_33 = arith.constant 0 : index
    %c0_34 = arith.constant 0 : index
    %75 = vector.load %arg10[%c0_33, %c0_34] : memref<96x24xf32, #tpu.memory_space<vmem>>, vector<96x24xf32>
    %cst_35 = arith.constant dense<0.000000e+00> : vector<16x24xf32>
    %76 = tpu.matmul %74, %75, %cst_35 {dimension_numbers = #tpu.dot_dimension_numbers<[1], [0], [0], [1], [0, 0, 1, 1], [], []>} : vector<16x96xf32>, vector<96x24xf32>, vector<16x24xf32> -> vector<16x24xf32>
    %77 = vector.broadcast %19 : vector<16x1xf32> to vector<16x8xf32>
    %78 = arith.mulf %41, %77 : vector<16x8xf32>
    %79 = vector.broadcast %19 : vector<16x1xf32> to vector<16x24xf32>
    %80 = arith.mulf %76, %79 : vector<16x24xf32>
    %81 = tpu.concatenate %78, %80, %19 in 1 : vector<16x8xf32>, vector<16x24xf32>, vector<16x1xf32> -> vector<16x33xf32>
    %82 = vector.shape_cast %81 : vector<16x33xf32> to vector<2x8x33xf32>
    %cst_36 = arith.constant dense<0.000000e+00> : vector<2x33xf32>
    %83 = vector.multi_reduction <add>, %82, %cst_36 [1] : vector<2x8x33xf32> to vector<2x33xf32>
    %84 = vector.extract_strided_slice %83 {offsets = [0, 32], sizes = [2, 1], strides = [1, 1]} : vector<2x33xf32> to vector<2x1xf32>
    %cst_37 = arith.constant 9.99999997E-7 : f32
    %85 = vector.broadcast %cst_37 : f32 to vector<2x1xf32>
    %86 = arith.maximumf %84, %85 : vector<2x1xf32>
    %87 = vector.extract_strided_slice %83 {offsets = [0, 0], sizes = [2, 32], strides = [1, 1]} : vector<2x33xf32> to vector<2x32xf32>
    %cst_38 = arith.constant 1.000000e+00 : f32
    %88 = vector.broadcast %cst_38 : f32 to vector<2x1xf32>
    %89 = arith.divf %88, %86 : vector<2x1xf32>
    %90 = vector.broadcast %89 : vector<2x1xf32> to vector<2x32xf32>
    %91 = arith.mulf %87, %90 : vector<2x32xf32>
    %c0_39 = arith.constant 0 : index
    %c0_40 = arith.constant 0 : index
    %c0_41 = arith.constant 0 : index
    %92 = vector.load %arg11[%c0_39, %c0_40, %c0_41] : memref<1x2x32xf32, #tpu.memory_space<vmem>>, vector<1x2x32xf32>
    %93 = vector.shape_cast %92 : vector<1x2x32xf32> to vector<2x32xf32>
    %94 = vector.shape_cast %91 : vector<2x32xf32> to vector<1x2x32xf32>
    tpu.vector_store %arg11[%c0_39, %c0_40, %c0_41], %94 {strides = array<i32>} : memref<1x2x32xf32, #tpu.memory_space<vmem>>, vector<1x2x32xf32>,
    return
  }
  func.func @transform_0(%arg0: i32) -> (i32, i32, i32) {
    %c0_i32 = arith.constant 0 : i32
    %c0_i32_0 = arith.constant 0 : i32
    %c0_i32_1 = arith.constant 0 : i32
    return %arg0, %c0_i32, %c0_i32_0 : i32, i32, i32
  }
  func.func @transform_1(%arg0: i32) -> (i32, i32, i32) {
    %c0_i32 = arith.constant 0 : i32
    %c0_i32_0 = arith.constant 0 : i32
    %c0_i32_1 = arith.constant 0 : i32
    return %arg0, %c0_i32, %c0_i32_0 : i32, i32, i32
  }
  func.func @transform_2(%arg0: i32) -> (i32, i32, i32) {
    %c0_i32 = arith.constant 0 : i32
    %c0_i32_0 = arith.constant 0 : i32
    %c0_i32_1 = arith.constant 0 : i32
    return %arg0, %c0_i32, %c0_i32_0 : i32, i32, i32
  }
  func.func @transform_3(%arg0: i32) -> (i32, i32) {
    %c0_i32 = arith.constant 0 : i32
    %c0_i32_0 = arith.constant 0 : i32
    %c0_i32_1 = arith.constant 0 : i32
    return %c0_i32, %c0_i32_0 : i32, i32
  }
  func.func @transform_4(%arg0: i32) -> (i32, i32) {
    %c0_i32 = arith.constant 0 : i32
    %c0_i32_0 = arith.constant 0 : i32
    %c0_i32_1 = arith.constant 0 : i32
    return %c0_i32, %c0_i32_0 : i32, i32
  }
  func.func @transform_5(%arg0: i32) -> (i32, i32) {
    %c0_i32 = arith.constant 0 : i32
    %c0_i32_0 = arith.constant 0 : i32
    %c0_i32_1 = arith.constant 0 : i32
    return %c0_i32, %c0_i32_0 : i32, i32
  }
  func.func @transform_6(%arg0: i32) -> (i32, i32) {
    %c0_i32 = arith.constant 0 : i32
    %c0_i32_0 = arith.constant 0 : i32
    %c0_i32_1 = arith.constant 0 : i32
    return %c0_i32, %c0_i32_0 : i32, i32
  }
  func.func @transform_7(%arg0: i32) -> (i32, i32) {
    %c0_i32 = arith.constant 0 : i32
    %c0_i32_0 = arith.constant 0 : i32
    %c0_i32_1 = arith.constant 0 : i32
    return %c0_i32, %c0_i32_0 : i32, i32
  }
  func.func @transform_8(%arg0: i32) -> (i32, i32) {
    %c0_i32 = arith.constant 0 : i32
    %c0_i32_0 = arith.constant 0 : i32
    %c0_i32_1 = arith.constant 0 : i32
    return %c0_i32, %c0_i32_0 : i32, i32
  }
  func.func @transform_9(%arg0: i32) -> (i32, i32) {
    %c0_i32 = arith.constant 0 : i32
    %c0_i32_0 = arith.constant 0 : i32
    %c0_i32_1 = arith.constant 0 : i32
    return %c0_i32, %c0_i32_0 : i32, i32
  }
  func.func @transform_10(%arg0: i32) -> (i32, i32, i32) {
    %c0_i32 = arith.constant 0 : i32
    %c0_i32_0 = arith.constant 0 : i32
    %c0_i32_1 = arith.constant 0 : i32
    return %arg0, %c0_i32, %c0_i32_0 : i32, i32, i32
  }
}

</mosaic_0001>

<bundles_post_ra>
// kernel: pool_se3.1
= control target key start
LH: loop header
LB: loop body
LE: loop exit
PB: predicated region body
PF: predicated region fallthrough
CT: control target
= control target key end

     0   :  { %vm194_vm0 = vcmask 195584   ;;  %vm44_vm1 = vcmask 64512   ;;  %vm161_vm6 = vcmask 261120   ;;  %vm316_vm9 = vcmask 523264   ;;  %s712_s7 = inlined_call_operand.vmem [shape: f32[24,96], index: 7, kind: input, shape index: {}]   ;;  %s713_s1 = inlined_call_operand.vmem [shape: f32[1,16,24], index: 1, kind: input, shape index: {}]   ;;  %s714_s4 = inlined_call_operand.vmem [shape: f32[8,33], index: 4, kind: input, shape index: {}]   ;;  %s715_s0 = inlined_call_operand.vmem [shape: f32[1,16,8], index: 0, kind: input, shape index: {}]   ;;  %s716_s8 = inlined_call_operand.vmem [shape: f32[1,32], index: 8, kind: input, shape index: {}]   ;;  %s717_s5 = inlined_call_operand.vmem [shape: f32[1,32], index: 5, kind: input, shape index: {}]   ;;  %s718_s3 = inlined_call_operand.<no memory space> [shape: f32[1,1], index: 3, kind: input, shape index: {}]   ;;  %s719_s2 = inlined_call_operand.vmem [shape: f32[1,16,1], index: 2, kind: input, shape index: {}]   ;;  %s720_s9 = inlined_call_operand.vmem [shape: f32[96,24], index: 9, kind: input, shape index: {}]   ;;  %s721_s6 = inlined_call_operand.vmem [shape: f32[32,8], index: 6, kind: input, shape index: {}]   ;;  %s722_s10 = inlined_call_operand.vmem [shape: f32[1,2,32], index: 10, kind: output, shape index: {}]  }
   0x1   :  { %v193_v0 = vld [vmem:[%s712_s7 + $0x10] sm:$0xff]  ;;  %v192_v1 = vld [vmem:[%s712_s7 + $0x8] sm:$0xff]  ;;  %v191_v2 = vld [vmem:[%s712_s7] sm:$0xff]  ;;  %s515_s7 = smov 96   ;;  %v15_v54 = vstv %s718_s3  ;;  %s517_s3 = smov 32   ;;  %vm331_vm10 = vcmask 785408  }
   0x2   :  { %214 = vmatpush.msra.mxu2 %v193_v0  ;;  %v39_v3 = vld [vmem:[%s713_s1] sm:$0xff]  ;;  %v40_v4 = vld [vmem:[%s713_s1 + $0x8] sm:$0xff]  ;;  %s516_s1 = smov 64   ;;  %16 = vst [vmem:[#allocation2] sm:$0x1] %v15_v54 }
   0x3   :  { %v43_v5 = vld [vmem:[%s714_s4] sm:$0xff]  ;;  %v38_v11 = vld [vmem:[%s715_s0 + $0x8] sm:$0xff] }
   0x4   :  { %215 = vmatpush.msra.mxu2 %v192_v1  ;;  %v37_v6 = vld [vmem:[%s715_s0] sm:$0xff]  ;;  %66 = vmatpush.msra.mxu0 %v43_v5 }
   0x5   :  { %457 = vmatmul.msk.f32.vlgmr.msra.gmra.mxu0 %vm44_vm1, %v37_v6  ;;  %v489_v32 = vld [vmem:[%s716_s8] ss:$0 sm:$0xff] }
   0x6   :  { %216 = vmatpush.msra.mxu2 %v191_v2  ;;  %v490_v56 = vld [vmem:[%s717_s5] ss:$0 sm:$0xff] }
   0x7   :  { %463 = vmatmul.msk.f32.vlgmr.msra.gmra.mxu2 %vm194_vm0, %v39_v3  ;;  %v319_v54 = vld [vmem:[%s720_s9] sm:$0xff] }
   0x9   :  { %v74_v2 = vld [vmem:[#allocation2] sm:$0x1] }
   0xa   :  { %479 = vpush %v74_v2 }
   0xd   :  { %458 = vmatmul.msk.f32.gmra.mxu0 %vm44_vm1, %v38_v11 }
   0xf   :  { %464 = vmatmul.msk.f32.gmra.mxu2 %vm194_vm0, %v40_v4 }
  0x82   :  { %v617_v55 = vpop.f32.mrf.mxu0 }
  0x83   :  { %v127_v59 = vand.u32 2147483647, %v617_v55 }
  0x85   :  { %v129_v61 = vmax.f32 %v127_v59, 1e-12  ;;  %v518_v59 = vmov 32  }
  0x86   :  { %486 = vset.pattern.permute.xlu1 %v518_v59  ;;  %487 = vset.pattern.permute.xlu2 %v518_v59 }
  0x87   :  { %v135_v63 = vmul.f32 %v490_v56, %v129_v61  ;;  %488 = vset.pattern.permute.xlu0 %v518_v59 }
  0x89   :  { %v137_v1 = vmul.f32 %v135_v63, %v135_v63 }
  0x8a   :  { %v597_v7 = vpop.f32.mrf.mxu2 }
  0x8b   :  { %v224_v8 = vmul.f32 %v597_v7, %v597_v7  ;;  %v139_v4 = vmul.f32 %v137_v1, %v135_v63 }
  0x8d   :  { %228 = vrot.lane.b32.xlu1 %v224_v8, %s515_s7 }
  0x92   :  { %v601_v9 = vpop.f32.mrf.mxu2 }
  0x93   :  { %v225_v10 = vmul.f32 %v601_v9, %v601_v9 }
  0x95   :  { %236 = vrot.lane.b32.xlu1 %v224_v8, %s516_s1  ;;  %230 = vrot.lane.b32.xlu0 %v225_v10, %s515_s7 }
  0x9d   :  { %238 = vrot.lane.b32.xlu0 %v225_v10, %s516_s1 }
  0xff   :  { %v229_v12 = vpop.permute.xlu1 %228 }
 0x100   :  { %v234_v13 = vadd.f32 %v229_v12, %v224_v8  ;;  %v42_v8 = vld [vmem:[%s719_s2 + $0x8] sm:$0xff] }
 0x107   :  { %v237_v14 = vpop.permute.xlu1 %236  ;;  %v231_v15 = vpop.permute.xlu0 %230 }
 0x108   :  { %v242_v16 = vadd.f32 %v237_v14, %v234_v13  ;;  %v235_v17 = vadd.f32 %v231_v15, %v225_v10  ;;  %v141_v10 = vmul.f32 0.044715, %v139_v4  ;;  %v41_v14 = vld [vmem:[%s719_s2] sm:$0xff] }
 0x10a   :  { %491 = vrsqrt.f32 %v242_v16  ;;  %vm251_vm2 = vcmp.eq.f32.partialorder %v242_v16, inf  ;;  %v254_v30 = vand.u32 2147483648, %v242_v16  ;;  %vm253_vm3 = vcmp.eq.f32.partialorder %v242_v16, 0.0 }
 0x10b   :  { %v143_v12 = vadd.f32 %v141_v10, %v135_v63 }
 0x10d   :  { %v145_v13 = vmul.f32 0.7978846, %v143_v12 }
 0x10f   :  { %v239_v18 = vpop.permute.xlu0 %238 }
 0x110   :  { %v492_v19 = vpop.eup %491  ;;  %v243_v20 = vadd.f32 %v239_v18, %v235_v17 }
 0x111   :  { %v245_v21 = vmul.f32 %v492_v19, %v242_v16 }
 0x112   :  { %493 = vrsqrt.f32 %v243_v20  ;;  %vm263_vm4 = vcmp.eq.f32.partialorder %v243_v20, inf  ;;  %v266_v41 = vand.u32 2147483648, %v243_v20  ;;  %vm265_vm5 = vcmp.eq.f32.partialorder %v243_v20, 0.0 }
 0x113   :  { %v246_v22 = vmul.f32 %v492_v19, %v245_v21  ;;  %v329_v21 = vld [vmem:[%s720_s9 + $0x50] sm:$0xff] }
 0x115   :  { %v247_v23 = vmul.f32 0.5, %v246_v22  ;;  %v159_v22 = vld [vmem:[%s721_s6 + $0x10] sm:$0xff] }
 0x117   :  { %v248_v24 = vsub.f32 1.5, %v247_v23  ;;  %v71_v23 = vpop.f32.mrf.mxu0 }
 0x118   :  { %v494_v25 = vpop.eup %493 }
 0x119   :  { %v257_v26 = vmul.f32 %v494_v25, %v243_v20  ;;  %v249_v27 = vmul.f32 %v492_v19, %v248_v24  ;;  %v330_v19 = vld [vmem:[%s720_s9 + $0x58] sm:$0xff]  ;;  %v328_v24 = vld [vmem:[%s720_s9 + $0x48] sm:$0xff] }
 0x11a   :  { %467 = vmatpush.msra.mxu3 %v330_v19  ;;  %342 = vmatpush.msrb.mxu0 %v330_v19 }
 0x11b   :  { %v250_v28 = vmul.f32 %v249_v27, %v242_v16  ;;  %v258_v29 = vmul.f32 %v494_v25, %v257_v26  ;;  %v128_v26 = vand.u32 2147483647, %v71_v23 }
 0x11c   :  { %468 = vmatpush.msra.mxu3 %v329_v21  ;;  %343 = vmatpush.msrb.mxu0 %v329_v21 }
 0x11d   :  { %v252_v31 = vsel %vm251_vm2, %v242_v16, %v250_v28  ;;  %v259_v33 = vmul.f32 0.5, %v258_v29  ;;  %v327_v28 = vld [vmem:[%s720_s9 + $0x40] sm:$0xff]  ;;  %vm387_vm2 = vcmask 269312  }
 0x11e   :  { %v255_v34 = vsel %vm253_vm3, %v254_v30, %v252_v31  ;;  %v157_v29 = vld [vmem:[%s721_s6] sm:$0xff]  ;;  %v130_v30 = vmax.f32 %v128_v26, 1e-12  ;;  %469 = vmatpush.msra.mxu3 %v328_v24  ;;  %v326_v31 = vld [vmem:[%s720_s9 + $0x38] sm:$0xff]  ;;  %344 = vmatpush.msrb.mxu0 %v328_v24 }
 0x11f   :  { %v268_v35 = vmax.f32 %v255_v34, 1e-12  ;;  %v260_v36 = vsub.f32 1.5, %v259_v33  ;;  %v325_v33 = vld [vmem:[%s720_s9 + $0x30] sm:$0xff] }
 0x120   :  { %470 = vmatpush.msra.mxu3 %v327_v28  ;;  %345 = vmatpush.msrb.mxu0 %v327_v28 }
 0x121   :  { %v274_v37 = vmul.f32 %v489_v32, %v268_v35  ;;  %v261_v38 = vmul.f32 %v494_v25, %v260_v36  ;;  %v158_v25 = vld [vmem:[%s721_s6 + $0x8] sm:$0xff] }
 0x122   :  { %471 = vmatpush.msra.mxu3 %v326_v31  ;;  %346 = vmatpush.msrb.mxu0 %v326_v31 }
 0x123   :  { %v276_v39 = vmul.f32 %v274_v37, %v274_v37  ;;  %v262_v40 = vmul.f32 %v261_v38, %v243_v20 }
 0x124   :  { %472 = vmatpush.msra.mxu3 %v325_v33  ;;  %347 = vmatpush.msrb.mxu0 %v325_v33 }
 0x125   :  { %v278_v42 = vmul.f32 %v276_v39, %v274_v37  ;;  %v264_v43 = vsel %vm263_vm4, %v243_v20, %v262_v40  ;;  %v160_v20 = vld [vmem:[%s721_s6 + $0x18] sm:$0xff]  ;;  %s480_s6 = spop %479 }
 0x126   :  { %v267_v44 = vsel %vm265_vm5, %v266_v41, %v264_v43  ;;  %180 = vmatpush.msra.mxu1 %v160_v20  ;;  %v76_v41 = vstv %s480_s6 }
 0x127   :  { %v280_v45 = vmul.f32 0.044715, %v278_v42  ;;  %v269_v46 = vmax.f32 %v267_v44, 1e-12  ;;  %v77_v44 = vadd.f32 %v76_v41, %v617_v55 }
 0x128   :  { %181 = vmatpush.msra.mxu1 %v159_v22 }
 0x129   :  { %v282_v47 = vadd.f32 %v280_v45, %v274_v37  ;;  %v275_v48 = vmul.f32 %v489_v32, %v269_v46  ;;  %v136_v32 = vmul.f32 %v490_v56, %v130_v30  ;;  %v324_v46 = vld [vmem:[%s720_s9 + $0x28] sm:$0xff] }
 0x12a   :  { %182 = vmatpush.msra.mxu1 %v158_v25  ;;  %473 = vmatpush.msra.mxu3 %v324_v46 }
 0x12b   :  { %v284_v49 = vmul.f32 0.7978846, %v282_v47  ;;  %v277_v50 = vmul.f32 %v275_v48, %v275_v48  ;;  %v138_v34 = vmul.f32 %v136_v32, %v136_v32  ;;  %v323_v47 = vld [vmem:[%s720_s9 + $0x20] sm:$0xff]  ;;  %348 = vmatpush.msrb.mxu0 %v324_v46 }
 0x12c   :  { %183 = vmatpush.msra.mxu1 %v157_v29  ;;  %474 = vmatpush.msra.mxu3 %v323_v47 }
 0x12d   :  { %495 = vtanh.f32 %v284_v49  ;;  %v279_v51 = vmul.f32 %v277_v50, %v275_v48  ;;  %v140_v35 = vmul.f32 %v138_v34, %v136_v32  ;;  %v322_v49 = vld [vmem:[%s720_s9 + $0x18] sm:$0xff]  ;;  %349 = vmatpush.msrb.mxu0 %v323_v47  ;;  %v321_v50 = vld [vmem:[%s720_s9 + $0x10] sm:$0xff] }
 0x12e   :  { %475 = vmatpush.msra.mxu3 %v322_v49 }
 0x12f   :  { %v281_v52 = vmul.f32 0.044715, %v279_v51  ;;  %v142_v36 = vmul.f32 0.044715, %v140_v35  ;;  %v78_v51 = vadd.f32 %v76_v41, %v71_v23  ;;  %350 = vmatpush.msrb.mxu0 %v322_v49 }
 0x130   :  { %476 = vmatpush.msra.mxu3 %v321_v50 }
 0x131   :  { %v283_v53 = vadd.f32 %v281_v52, %v275_v48  ;;  %351 = vmatpush.msrb.mxu0 %v321_v50  ;;  %v320_v52 = vld [vmem:[%s720_s9 + $0x8] sm:$0xff]  ;;  %s519_s9 = smov 8  }
 0x132   :  { %477 = vmatpush.msra.mxu3 %v320_v52 }
 0x133   :  { %v496_v57 = vpop.eup %495  ;;  %v285_v58 = vmul.f32 0.7978846, %v283_v53  ;;  %v460_v53 = vmul.f32 -1.442695, %v78_v51  ;;  %352 = vmatpush.msrb.mxu0 %v320_v52 }
 0x134   :  { %v288_v60 = vadd.f32 1.0, %v496_v57  ;;  %478 = vmatpush.msra.mxu3 %v319_v54 }
 0x135   :  { %497 = vtanh.f32 %v285_v58  ;;  %353 = vmatpush.msrb.mxu0 %v319_v54 }
 0x136   :  { %v290_v62 = vmul.f32 0.5, %v288_v60  ;;  %499 = vtanh.f32 %v145_v13 }
 0x138   :  { %v623_v0 = vmul.f32 %v290_v62, %v274_v37  ;;  %v144_v37 = vadd.f32 %v142_v36, %v136_v32 }
 0x13a   :  { %306 = vrot.lane.b32.xlu1 %v623_v0, %s516_s1  ;;  %298 = vrot.lane.b32.xlu0 %v623_v0, %s517_s3  ;;  %v146_v38 = vmul.f32 0.7978846, %v144_v37  ;;  %v294_v24 = vmul.f32 %v623_v0, %v597_v7 }
 0x13b   :  { %v498_v3 = vpop.eup %497 }
 0x13c   :  { %v289_v5 = vadd.f32 1.0, %v498_v3  ;;  %v500_v15 = vpop.eup %499  ;;  %501 = vtanh.f32 %v146_v38 }
 0x13d   :  { %v149_v16 = vadd.f32 1.0, %v500_v15 }
 0x13e   :  { %v291_v6 = vmul.f32 0.5, %v289_v5 }
 0x13f   :  { %v151_v17 = vmul.f32 0.5, %v149_v16 }
 0x140   :  { %v631_v11 = vmul.f32 %v291_v6, %v275_v48  ;;  %v459_v48 = vmul.f32 -1.442695, %v77_v44 }
 0x141   :  { %v153_v18 = vmul.f32 %v151_v17, %v135_v63 }
 0x142   :  { %300 = vrot.lane.b32.xlu2 %v631_v11, %s517_s3  ;;  %121 = vrot.lane.b32.xlu0 %v42_v8, %s517_s3  ;;  %v502_v39 = vpop.eup %501  ;;  %503 = vpow2.f32 %v459_v48  ;;  %v295_v10 = vmul.f32 %v631_v11, %v601_v9 }
 0x143   :  { %v155_v27 = vmul.f32 %v153_v18, %v617_v55  ;;  %v150_v40 = vadd.f32 1.0, %v502_v39  ;;  %505 = vpow2.f32 %v460_v53 }
 0x145   :  { %461 = vmatmul.msk.f32.vlgmr.msra.gmra.mxu1 %vm161_vm6, %v155_v27  ;;  %v152_v42 = vmul.f32 0.5, %v150_v40 }
 0x147   :  { %v154_v43 = vmul.f32 %v152_v42, %v136_v32 }
 0x148   :  { %v504_v55 = vpop.eup %503 }
 0x149   :  { %v156_v45 = vmul.f32 %v154_v43, %v71_v23  ;;  %v85_v56 = vadd.f32 1.0, %v504_v55  ;;  %v506_v57 = vpop.eup %505 }
 0x14a   :  { %308 = vrot.lane.b32.xlu2 %v631_v11, %s516_s1  ;;  %v86_v58 = vadd.f32 1.0, %v506_v57 }
 0x14b   :  { %507 = vrcp.f32 %v85_v56  ;;  %vm92_vm7 = vweird.f32 %v85_v56  ;;  %v98_v5 = vand.u32 2147483648, %v85_v56  ;;  %v96_v13 = vand.u32 2147483647, %v85_v56 }
 0x14c   :  { %509 = vrcp.f32 %v86_v58  ;;  %vm107_vm13 = vweird.f32 %v86_v58  ;;  %v113_v11 = vand.u32 2147483648, %v86_v58  ;;  %v111_v22 = vand.u32 2147483647, %v86_v58 }
 0x14d   :  { %462 = vmatmul.msk.f32.gmra.mxu1 %vm161_vm6, %v156_v45  ;;  %v99_v17 = vor.u32 1.1754944e-38, %v98_v5  ;;  %vm97_vm12 = vcmp.eq.f32.partialorder %v96_v13, 8.507059e+37 }
 0x14e   :  { %v114_v29 = vor.u32 1.1754944e-38, %v113_v11  ;;  %vm112_vm0 = vcmp.eq.f32.partialorder %v111_v22, 8.507059e+37 }
 0x151   :  { %v508_v60 = vpop.eup %507 }
 0x152   :  { %119 = vrot.lane.b32.xlu2 %v41_v14, %s517_s3  ;;  %v88_v61 = vmul.f32 %v508_v60, %v85_v56  ;;  %v510_v62 = vpop.eup %509  ;;  %vm93_vm8 = vweird.f32 %v508_v60 }
 0x153   :  { %v103_v2 = vmul.f32 %v510_v62, %v86_v58  ;;  %vm94_vm11 = vmor %vm92_vm7, %vm93_vm8  ;;  %vm108_vm14 = vweird.f32 %v510_v62 }
 0x154   :  { %v89_v1 = vsub.f32 1.0, %v88_v61  ;;  %vm109_vm15 = vmor %vm107_vm13, %vm108_vm14 }
 0x155   :  { %v104_v6 = vsub.f32 1.0, %v103_v2 }
 0x156   :  { %v90_v3 = vmul.f32 %v508_v60, %v89_v1 }
 0x157   :  { %v105_v18 = vmul.f32 %v510_v62, %v104_v6 }
 0x158   :  { %v91_v12 = vadd.f32 %v508_v60, %v90_v3 }
 0x159   :  { %v106_v21 = vadd.f32 %v510_v62, %v105_v18 }
 0x15a   :  { %v95_v19 = vsel %vm94_vm11, %v508_v60, %v91_v12  ;;  %vm451_vm11 = vcmask 254976  }
 0x15b   :  { %v100_v20 = vsel %vm97_vm12, %v99_v17, %v95_v19  ;;  %v110_v31 = vsel %vm109_vm15, %v510_v62, %v106_v21 }
 0x15c   :  { %v115_v33 = vsel %vm112_vm0, %v114_v29, %v110_v31 }
 0x19c   :  { %v301_v63 = vpop.permute.xlu2 %300 }
 0x19d   :  { %v305_v4 = vmul.f32 %v301_v63, %v601_v9 }
 0x19f   :  { %v315_v15 = vsel %vm161_vm6, %v295_v10, %v305_v4 }
 0x1a4   :  { %v309_v8 = vpop.permute.xlu2 %308 }
 0x1a5   :  { %v313_v14 = vmul.f32 %v309_v8, %v601_v9 }
 0x1a7   :  { %v318_v16 = vsel %vm316_vm9, %v315_v15, %v313_v14 }
 0x1a8   :  { %466 = vmatmul.msk.f32.vlgmr.msra.gmra.mxu3 %vm331_vm10, %v318_v16 }
 0x1ac   :  { %v307_v23 = vpop.permute.xlu1 %306  ;;  %v299_v9 = vpop.permute.xlu0 %298 }
 0x1ad   :  { %v312_v25 = vmul.f32 %v307_v23, %v597_v7  ;;  %v304_v26 = vmul.f32 %v299_v9, %v597_v7  ;;  %v120_v27 = vpop.permute.xlu2 %119 }
 0x1ae   :  { %v125_v28 = vmul.f32 %v120_v27, %v100_v20 }
 0x1af   :  { %v314_v30 = vsel %vm161_vm6, %v294_v24, %v304_v26 }
 0x1b0   :  { %v317_v32 = vsel %vm316_vm9, %v314_v30, %v312_v25  ;;  %363 = vperm.xlu1 %486, %v125_v28  }
 0x1b1   :  { %465 = vmatmul.msk.f32.vlgmr.msrb.gmra.mxu0 %vm331_vm10, %v317_v32  ;;  %vm448_vm10 = vcmask 1041409  }
 0x1b4   :  { %v122_v34 = vpop.permute.xlu0 %121 }
 0x1b5   :  { %v126_v35 = vmul.f32 %v122_v34, %v115_v33 }
 0x1b7   :  { %368 = vperm.xlu2 %487, %v126_v35  }
 0x1c2   :  { %v185_v40 = vpop.f32.mrf.mxu1 }
 0x1ca   :  { %v188_v41 = vpop.f32.mrf.mxu1 }
 0x211   :  { %v369_v0 = vpop.permute.xlu2 %368 }
 0x212   :  { %v372_v42 = vmul.f32 %v369_v0, %v188_v41 }
 0x222   :  { %v364_v7 = vpop.permute.xlu1 %363 }
 0x223   :  { %v371_v45 = vmul.f32 %v364_v7, %v185_v40 }
 0x22b   :  { %v358_v36 = vpop.f32.mrf.mxu3 }
 0x22c   :  { %v374_v37 = vmul.f32 %v369_v0, %v358_v36 }
 0x22e   :  { %v355_v38 = vpop.f32.mrf.mxu0  ;;  %379 = vrot.lane.b32.xlu1 %v374_v37, %s519_s9 }
 0x22f   :  { %v373_v39 = vmul.f32 %v364_v7, %v355_v38 }
 0x231   :  { %377 = vrot.lane.b32.xlu0 %v373_v39, %s519_s9 }
 0x2a0   :  { %v380_v43 = vpop.permute.xlu1 %379 }
 0x2a1   :  { %v384_v44 = vsel %vm44_vm1, %v372_v42, %v380_v43 }
 0x2a2   :  { %v386_v46 = vsel %vm161_vm6, %v384_v44, %v126_v35 }
 0x2a3   :  { %v395_v47 = vsel %vm387_vm2, %v386_v46, 0.0  ;;  %v378_v48 = vpop.permute.xlu0 %377 }
 0x2a4   :  { %v396_v49 = vrot.slane %v395_v47, 4  ;;  %v383_v50 = vsel %vm44_vm1, %v371_v45, %v378_v48 }
 0x2a5   :  { %v385_v51 = vsel %vm161_vm6, %v383_v50, %v125_v28 }
 0x2a6   :  { %v397_v52 = vadd.f32 %v396_v49, %v395_v47  ;;  %v388_v53 = vsel %vm387_vm2, %v385_v51, 0.0 }
 0x2a7   :  { %v389_v54 = vrot.slane %v388_v53, 4 }
 0x2a8   :  { %v398_v55 = vrot.slane %v397_v52, 2 }
 0x2a9   :  { %v390_v56 = vadd.f32 %v389_v54, %v388_v53 }
 0x2aa   :  { %v399_v57 = vadd.f32 %v398_v55, %v397_v52 }
 0x2ab   :  { %v391_v58 = vrot.slane %v390_v56, 2 }
 0x2ac   :  { %v400_v59 = vrot.slane %v399_v57, 1 }
 0x2ad   :  { %v392_v60 = vadd.f32 %v391_v58, %v390_v56 }
 0x2ae   :  { %v401_v61 = vadd.f32 %v400_v59, %v399_v57 }
 0x2af   :  { %v393_v62 = vrot.slane %v392_v60, 1 }
 0x2b0   :  { %v403_v63 = vmax.f32 %v401_v61, 1e-06 }
 0x2b1   :  { %v394_v1 = vadd.f32 %v393_v62, %v392_v60 }
 0x2b2   :  { %511 = vrcp.f32 %v403_v63  ;;  %v430_v8 = vand.u32 2147483648, %v403_v63  ;;  %v428_v13 = vand.u32 2147483647, %v403_v63  ;;  %vm424_vm3 = vweird.f32 %v403_v63 }
 0x2b3   :  { %v402_v2 = vmax.f32 %v394_v1, 1e-06 }
 0x2b4   :  { %v431_v17 = vor.u32 1.1754944e-38, %v430_v8  ;;  %vm429_vm6 = vcmp.eq.f32.partialorder %v428_v13, 8.507059e+37 }
 0x2b5   :  { %513 = vrcp.f32 %v402_v2  ;;  %v415_v16 = vand.u32 2147483648, %v402_v2  ;;  %v413_v19 = vand.u32 2147483647, %v402_v2  ;;  %vm409_vm7 = vweird.f32 %v402_v2 }
 0x2b7   :  { %v416_v22 = vor.u32 1.1754944e-38, %v415_v16  ;;  %vm414_vm9 = vcmp.eq.f32.partialorder %v413_v19, 8.507059e+37 }
 0x2b8   :  { %v512_v3 = vpop.eup %511 }
 0x2b9   :  { %v420_v4 = vmul.f32 %v512_v3, %v403_v63  ;;  %vm425_vm1 = vweird.f32 %v512_v3 }
 0x2ba   :  { %vm426_vm4 = vmor %vm424_vm3, %vm425_vm1 }
 0x2bb   :  { %v514_v5 = vpop.eup %513  ;;  %v421_v6 = vsub.f32 1.0, %v420_v4 }
 0x2bc   :  { %v405_v10 = vmul.f32 %v514_v5, %v402_v2  ;;  %vm410_vm5 = vweird.f32 %v514_v5 }
 0x2bd   :  { %v422_v12 = vmul.f32 %v512_v3, %v421_v6  ;;  %vm411_vm8 = vmor %vm409_vm7, %vm410_vm5 }
 0x2be   :  { %v406_v14 = vsub.f32 1.0, %v405_v10 }
 0x2bf   :  { %v423_v15 = vadd.f32 %v512_v3, %v422_v12 }
 0x2c0   :  { %v407_v18 = vmul.f32 %v514_v5, %v406_v14 }
 0x2c1   :  { %v427_v11 = vsel %vm426_vm4, %v512_v3, %v423_v15 }
 0x2c2   :  { %v432_v20 = vsel %vm429_vm6, %v431_v17, %v427_v11  ;;  %v408_v21 = vadd.f32 %v514_v5, %v407_v18 }
 0x2c3   :  { %441 = vperm.xlu0 %488, %v432_v20  }
 0x2c4   :  { %v412_v23 = vsel %vm411_vm8, %v514_v5, %v408_v21 }
 0x2c5   :  { %v417_v9 = vsel %vm414_vm9, %v416_v22, %v412_v23 }
 0x2c6   :  { %436 = vperm.xlu2 %487, %v417_v9  }
 0x320   :  { %v437_v24 = vpop.permute.xlu2 %436 }
 0x321   :  { %v444_v26 = vmul.f32 %v437_v24, %v394_v1 }
 0x335   :  { %v442_v25 = vpop.permute.xlu0 %441 }
 0x336   :  { %v445_v27 = vmul.f32 %v442_v25, %v401_v61 }
 0x338   :  { %v449_v28 = vsel %vm448_vm10, %v445_v27, %v444_v26 }
 0x339   :  { %452 = vst.msk [vmem:[%s722_s10] sm:$0x3] %vm451_vm11, %v449_v28 }

</bundles_post_ra>
